<compile_context>
chip_gen: v6e
topology: v6e:2x2x1
jax: 0.10.0
libtpu: 0.0.40
codegen_flags: <defaults>
</compile_context>

<pallas_src>
import jax
import jax.numpy as jnp
from jax import lax
from jax.experimental import pallas as pl
from jax.experimental.pallas import tpu as pltpu

BN_EPS = 1e-5
LANES = 128

# Row layout of the packed parameter slab [N_ROWS, 128] (all f32, zero padded):
#   rows   0..255 : W1  ([256, 64] in cols 0:64)
#   rows 256..383 : W2  ([ 64, 32] in rows 0:64 / cols 0:32 of this block)
#   rows 384..511 : W3  ([ 32, 16])
#   rows 512..639 : W4  ([ 16,  1])
#   rows 640..649 : b1,g1,be1, b2,g2,be2, b3,g3,be3, b4 (one row each)
#   rows 650..655 : zero padding (row count multiple of 8)
W1_R0, W2_R0, W3_R0, W4_R0, VEC_R0 = 0, 256, 384, 512, 640
N_ROWS = 656


def pack_params(params):
    """Pack all weights/biases/BN params into one [656,128] f32 slab."""
    def pad_mat(w, rows):
        fi, fo = w.shape
        return jnp.zeros((rows, LANES), jnp.float32).at[:fi, :fo].set(w)

    def pad_row(v):
        v = jnp.asarray(v, jnp.float32).reshape(1, -1)
        return jnp.zeros((1, LANES), jnp.float32).at[:, : v.shape[1]].set(v)

    blocks = [
        pad_mat(params["w1"], 256),
        pad_mat(params["w2"], 128),
        pad_mat(params["w3"], 128),
        pad_mat(params["w4"], 128),
        pad_row(params["b1"]), pad_row(params["g1"]), pad_row(params["be1"]),
        pad_row(params["b2"]), pad_row(params["g2"]), pad_row(params["be2"]),
        pad_row(params["b3"]), pad_row(params["g3"]), pad_row(params["be3"]),
        pad_row(params["b4"]),
        jnp.zeros((N_ROWS - (VEC_R0 + 10), LANES), jnp.float32),
    ]
    return jnp.concatenate(blocks, axis=0)


def _relu_bn(h, gamma, beta, ones_bt, inv_b):
    """ReLU -> BatchNorm1d (training mode, biased variance).

    Batch (sublane) reductions are computed as a ones[1,B] @ h matmul so the
    cross-sublane work rides the (otherwise idle) MXU instead of the XLU/VPU.
    Padded lanes stay exactly zero (gamma/beta padding is zero).
    """
    h = jnp.maximum(h, 0.0)
    s1 = jnp.dot(ones_bt, h, preferred_element_type=jnp.float32) * inv_b        # E[h]
    s2 = jnp.dot(ones_bt, h * h, preferred_element_type=jnp.float32) * inv_b    # E[h^2]
    var = jnp.maximum(s2 - s1 * s1, 0.0)
    scale = gamma * lax.rsqrt(var + BN_EPS)
    return (h - s1) * scale + beta


def cls_mirco_kernel(x_ref, p_ref, o_ref):
    B = x_ref.shape[0]
    x = x_ref[...].astype(jnp.float32)

    # Aligned row-slices of the packed parameter slab (starts are multiples of 8).
    w1 = p_ref[W1_R0:W2_R0, :]          # [256,128]
    w2 = p_ref[W2_R0:W3_R0, :]          # [128,128]
    w3 = p_ref[W3_R0:W4_R0, :]          # [128,128]
    w4 = p_ref[W4_R0:VEC_R0, :]         # [128,128]
    vec = p_ref[VEC_R0:N_ROWS, :]       # [16,128]: one aligned load for all row params
    b1, g1, be1 = vec[0:1], vec[1:2], vec[2:3]
    b2, g2, be2 = vec[3:4], vec[4:5], vec[5:6]
    b3, g3, be3 = vec[6:7], vec[7:8], vec[8:9]
    b4 = vec[9:10]

    ones_bt = jnp.ones((1, B), jnp.float32)
    inv_b = jnp.float32(1.0 / B)

    # Linear(256,64) -> ReLU -> BN(64)     (all in a dense 128-lane space)
    h = jnp.dot(x, w1, preferred_element_type=jnp.float32) + b1
    h = _relu_bn(h, g1, be1, ones_bt, inv_b)
    # Linear(64,32) -> ReLU -> BN(32)
    h = jnp.dot(h, w2, preferred_element_type=jnp.float32) + b2
    h = _relu_bn(h, g2, be2, ones_bt, inv_b)
    # Linear(32,16) -> ReLU -> BN(16)
    h = jnp.dot(h, w3, preferred_element_type=jnp.float32) + b3
    h = _relu_bn(h, g3, be3, ones_bt, inv_b)
    # Linear(16,1): logits land in lane 0 of a lane-dense [B,128] output slab.
    out = jnp.dot(h, w4, preferred_element_type=jnp.float32) + b4
    o_ref[...] = out.astype(o_ref.dtype)


def cls_mirco_forward(x, packed_params):
    """x: [B, 256] float32, packed_params: [656, 128] f32.  Returns [B, 1]."""
    B = x.shape[0]
    flops = 2 * B * (256 * 64 + 64 * 32 + 32 * 16 + 16 * 1) \
            + 12 * B * (64 + 32 + 16)                       # BN/ReLU elementwise work
    bytes_accessed = x.size * x.dtype.itemsize \
        + packed_params.size * 4 + B * LANES * 4
    out = pl.pallas_call(
        cls_mirco_kernel,
        out_shape=jax.ShapeDtypeStruct((B, LANES), jnp.float32),
        in_specs=[pl.BlockSpec(memory_space=pltpu.MemorySpace.VMEM)] * 2,
        out_specs=pl.BlockSpec(memory_space=pltpu.MemorySpace.VMEM),
        compiler_params=pltpu.CompilerParams(
            # ~4 KiB/row of batch + 0.4 MiB of params; 32 MiB covers B in the
            # thousands on v5e/v6e/v7x while staying inside every chip's budget.
            vmem_limit_bytes=32 * 1024 * 1024,
        ),
        cost_estimate=pl.CostEstimate(
            flops=flops, transcendentals=3 * LANES, bytes_accessed=bytes_accessed),
    )(x, packed_params)
    return out[:, :1]


def init_params(key):
    """Deterministic init matching the module (weights stored [in, out])."""
    dims = [(256, 64), (64, 32), (32, 16), (16, 1)]
    params = {}
    keys = jax.random.split(key, 2 * len(dims))
    for i, (fan_in, fan_out) in enumerate(dims):
        kw, kb = keys[2 * i], keys[2 * i + 1]
        bound = 1.0 / jnp.sqrt(jnp.float32(fan_in))
        params[f"w{i+1}"] = jax.random.uniform(
            kw, (fan_in, fan_out), jnp.float32, -bound, bound)
        params[f"b{i+1}"] = jax.random.uniform(
            kb, (1, fan_out), jnp.float32, -bound, bound)
        if i < 3:  # first three Linears are followed by BatchNorm1d
            params[f"g{i+1}"] = jnp.ones((1, fan_out), jnp.float32)
            params[f"be{i+1}"] = jnp.zeros((1, fan_out), jnp.float32)
    return params


def reference_forward(x, params):
    """Pure-JAX reference (PyTorch training-mode BN, two-pass biased var)."""
    def bn_relu(h, g, b):
        h = jnp.maximum(h, 0.0)
        m = jnp.mean(h, axis=0, keepdims=True)
        v = jnp.mean((h - m) * (h - m), axis=0, keepdims=True)
        return (h - m) * lax.rsqrt(v + BN_EPS) * g + b

    h = x @ params["w1"] + params["b1"]
    h = bn_relu(h, params["g1"], params["be1"])
    h = h @ params["w2"] + params["b2"]
    h = bn_relu(h, params["g2"], params["be2"])
    h = h @ params["w3"] + params["b3"]
    h = bn_relu(h, params["g3"], params["be3"])
    return h @ params["w4"] + params["b4"]


if __name__ == "__main__":
    key = jax.random.PRNGKey(0)
    k_param, k_x = jax.random.split(key)

    B = 8  # batch size (>= 2 required by training-mode BatchNorm statistics)
    params = init_params(k_param)
    packed = pack_params(params)
    x = jax.random.normal(k_x, (B, 256), jnp.float32)

    out = cls_mirco_forward(x, packed)
    out = jax.block_until_ready(out)

    ref = reference_forward(x, params)
    assert out.shape == (B, 1), out.shape
    assert jnp.allclose(out, ref, atol=1e-4, rtol=1e-4), (
        f"max abs err = {jnp.max(jnp.abs(out - ref))}")

    print("KERNEL_OK")
</pallas_src>

<mosaic_0001>
module attributes {stable_mosaic.version = 11 : i64} {
  func.func @cls_mirco_kernel(%arg0: memref<8x256xf32, #tpu.memory_space<vmem>>, %arg1: memref<656x128xf32, #tpu.memory_space<vmem>>, %arg2: memref<8x128xf32, #tpu.memory_space<vmem>>) attributes {dimension_semantics = [], scalar_prefetch = 0 : i64, scratch_operands = 0 : i64, tpu.core_type = #tpu.core_type<tc>} {
    %c0 = arith.constant 0 : index
    %c0_0 = arith.constant 0 : index
    %0 = vector.load %arg0[%c0, %c0_0] : memref<8x256xf32, #tpu.memory_space<vmem>>, vector<8x256xf32>
    %c0_1 = arith.constant 0 : index
    %c0_2 = arith.constant 0 : index
    %1 = vector.load %arg1[%c0_1, %c0_2] : memref<656x128xf32, #tpu.memory_space<vmem>>, vector<256x128xf32>
    %c256 = arith.constant 256 : index
    %c0_3 = arith.constant 0 : index
    %2 = vector.load %arg1[%c256, %c0_3] : memref<656x128xf32, #tpu.memory_space<vmem>>, vector<128x128xf32>
    %c384 = arith.constant 384 : index
    %c0_4 = arith.constant 0 : index
    %3 = vector.load %arg1[%c384, %c0_4] : memref<656x128xf32, #tpu.memory_space<vmem>>, vector<128x128xf32>
    %c512 = arith.constant 512 : index
    %c0_5 = arith.constant 0 : index
    %4 = vector.load %arg1[%c512, %c0_5] : memref<656x128xf32, #tpu.memory_space<vmem>>, vector<128x128xf32>
    %c640 = arith.constant 640 : index
    %c0_6 = arith.constant 0 : index
    %5 = vector.load %arg1[%c640, %c0_6] : memref<656x128xf32, #tpu.memory_space<vmem>>, vector<16x128xf32>
    %6 = vector.extract_strided_slice %5 {offsets = [0, 0], sizes = [1, 128], strides = [1, 1]} : vector<16x128xf32> to vector<1x128xf32>
    %7 = vector.extract_strided_slice %5 {offsets = [1, 0], sizes = [1, 128], strides = [1, 1]} : vector<16x128xf32> to vector<1x128xf32>
    %8 = vector.extract_strided_slice %5 {offsets = [2, 0], sizes = [1, 128], strides = [1, 1]} : vector<16x128xf32> to vector<1x128xf32>
    %9 = vector.extract_strided_slice %5 {offsets = [3, 0], sizes = [1, 128], strides = [1, 1]} : vector<16x128xf32> to vector<1x128xf32>
    %10 = vector.extract_strided_slice %5 {offsets = [4, 0], sizes = [1, 128], strides = [1, 1]} : vector<16x128xf32> to vector<1x128xf32>
    %11 = vector.extract_strided_slice %5 {offsets = [5, 0], sizes = [1, 128], strides = [1, 1]} : vector<16x128xf32> to vector<1x128xf32>
    %12 = vector.extract_strided_slice %5 {offsets = [6, 0], sizes = [1, 128], strides = [1, 1]} : vector<16x128xf32> to vector<1x128xf32>
    %13 = vector.extract_strided_slice %5 {offsets = [7, 0], sizes = [1, 128], strides = [1, 1]} : vector<16x128xf32> to vector<1x128xf32>
    %14 = vector.extract_strided_slice %5 {offsets = [8, 0], sizes = [1, 128], strides = [1, 1]} : vector<16x128xf32> to vector<1x128xf32>
    %15 = vector.extract_strided_slice %5 {offsets = [9, 0], sizes = [1, 128], strides = [1, 1]} : vector<16x128xf32> to vector<1x128xf32>
    %cst = arith.constant 1.000000e+00 : f32
    %16 = vector.broadcast %cst : f32 to vector<1x8xf32>
    %cst_7 = arith.constant dense<0.000000e+00> : vector<8x128xf32>
    %17 = tpu.matmul %0, %1, %cst_7 {dimension_numbers = #tpu.dot_dimension_numbers<[1], [0], [0], [1], [0, 0, 1, 1], [], []>} : vector<8x256xf32>, vector<256x128xf32>, vector<8x128xf32> -> vector<8x128xf32>
    %18 = vector.broadcast %6 : vector<1x128xf32> to vector<8x128xf32>
    %19 = arith.addf %17, %18 : vector<8x128xf32>
    %cst_8 = arith.constant 0.000000e+00 : f32
    %20 = vector.broadcast %cst_8 : f32 to vector<8x128xf32>
    %21 = arith.maximumf %19, %20 : vector<8x128xf32>
    %cst_9 = arith.constant dense<0.000000e+00> : vector<1x128xf32>
    %22 = tpu.matmul %16, %21, %cst_9 {dimension_numbers = #tpu.dot_dimension_numbers<[1], [0], [0], [1], [0, 0, 1, 1], [], []>} : vector<1x8xf32>, vector<8x128xf32>, vector<1x128xf32> -> vector<1x128xf32>
    %cst_10 = arith.constant 1.250000e-01 : f32
    %23 = vector.broadcast %cst_10 : f32 to vector<1x128xf32>
    %24 = arith.mulf %22, %23 : vector<1x128xf32>
    %25 = arith.mulf %21, %21 : vector<8x128xf32>
    %cst_11 = arith.constant dense<0.000000e+00> : vector<1x128xf32>
    %26 = tpu.matmul %16, %25, %cst_11 {dimension_numbers = #tpu.dot_dimension_numbers<[1], [0], [0], [1], [0, 0, 1, 1], [], []>} : vector<1x8xf32>, vector<8x128xf32>, vector<1x128xf32> -> vector<1x128xf32>
    %cst_12 = arith.constant 1.250000e-01 : f32
    %27 = vector.broadcast %cst_12 : f32 to vector<1x128xf32>
    %28 = arith.mulf %26, %27 : vector<1x128xf32>
    %29 = arith.mulf %24, %24 : vector<1x128xf32>
    %30 = arith.subf %28, %29 : vector<1x128xf32>
    %cst_13 = arith.constant 0.000000e+00 : f32
    %31 = vector.broadcast %cst_13 : f32 to vector<1x128xf32>
    %32 = arith.maximumf %30, %31 : vector<1x128xf32>
    %cst_14 = arith.constant 9.99999974E-6 : f32
    %33 = vector.broadcast %cst_14 : f32 to vector<1x128xf32>
    %34 = arith.addf %32, %33 : vector<1x128xf32>
    %35 = math.rsqrt %34 : vector<1x128xf32>
    %36 = arith.mulf %7, %35 : vector<1x128xf32>
    %37 = vector.broadcast %24 : vector<1x128xf32> to vector<8x128xf32>
    %38 = arith.subf %21, %37 : vector<8x128xf32>
    %39 = vector.broadcast %36 : vector<1x128xf32> to vector<8x128xf32>
    %40 = arith.mulf %38, %39 : vector<8x128xf32>
    %41 = vector.broadcast %8 : vector<1x128xf32> to vector<8x128xf32>
    %42 = arith.addf %40, %41 : vector<8x128xf32>
    %cst_15 = arith.constant dense<0.000000e+00> : vector<8x128xf32>
    %43 = tpu.matmul %42, %2, %cst_15 {dimension_numbers = #tpu.dot_dimension_numbers<[1], [0], [0], [1], [0, 0, 1, 1], [], []>} : vector<8x128xf32>, vector<128x128xf32>, vector<8x128xf32> -> vector<8x128xf32>
    %44 = vector.broadcast %9 : vector<1x128xf32> to vector<8x128xf32>
    %45 = arith.addf %43, %44 : vector<8x128xf32>
    %cst_16 = arith.constant 0.000000e+00 : f32
    %46 = vector.broadcast %cst_16 : f32 to vector<8x128xf32>
    %47 = arith.maximumf %45, %46 : vector<8x128xf32>
    %cst_17 = arith.constant dense<0.000000e+00> : vector<1x128xf32>
    %48 = tpu.matmul %16, %47, %cst_17 {dimension_numbers = #tpu.dot_dimension_numbers<[1], [0], [0], [1], [0, 0, 1, 1], [], []>} : vector<1x8xf32>, vector<8x128xf32>, vector<1x128xf32> -> vector<1x128xf32>
    %cst_18 = arith.constant 1.250000e-01 : f32
    %49 = vector.broadcast %cst_18 : f32 to vector<1x128xf32>
    %50 = arith.mulf %48, %49 : vector<1x128xf32>
    %51 = arith.mulf %47, %47 : vector<8x128xf32>
    %cst_19 = arith.constant dense<0.000000e+00> : vector<1x128xf32>
    %52 = tpu.matmul %16, %51, %cst_19 {dimension_numbers = #tpu.dot_dimension_numbers<[1], [0], [0], [1], [0, 0, 1, 1], [], []>} : vector<1x8xf32>, vector<8x128xf32>, vector<1x128xf32> -> vector<1x128xf32>
    %cst_20 = arith.constant 1.250000e-01 : f32
    %53 = vector.broadcast %cst_20 : f32 to vector<1x128xf32>
    %54 = arith.mulf %52, %53 : vector<1x128xf32>
    %55 = arith.mulf %50, %50 : vector<1x128xf32>
    %56 = arith.subf %54, %55 : vector<1x128xf32>
    %cst_21 = arith.constant 0.000000e+00 : f32
    %57 = vector.broadcast %cst_21 : f32 to vector<1x128xf32>
    %58 = arith.maximumf %56, %57 : vector<1x128xf32>
    %cst_22 = arith.constant 9.99999974E-6 : f32
    %59 = vector.broadcast %cst_22 : f32 to vector<1x128xf32>
    %60 = arith.addf %58, %59 : vector<1x128xf32>
    %61 = math.rsqrt %60 : vector<1x128xf32>
    %62 = arith.mulf %10, %61 : vector<1x128xf32>
    %63 = vector.broadcast %50 : vector<1x128xf32> to vector<8x128xf32>
    %64 = arith.subf %47, %63 : vector<8x128xf32>
    %65 = vector.broadcast %62 : vector<1x128xf32> to vector<8x128xf32>
    %66 = arith.mulf %64, %65 : vector<8x128xf32>
    %67 = vector.broadcast %11 : vector<1x128xf32> to vector<8x128xf32>
    %68 = arith.addf %66, %67 : vector<8x128xf32>
    %cst_23 = arith.constant dense<0.000000e+00> : vector<8x128xf32>
    %69 = tpu.matmul %68, %3, %cst_23 {dimension_numbers = #tpu.dot_dimension_numbers<[1], [0], [0], [1], [0, 0, 1, 1], [], []>} : vector<8x128xf32>, vector<128x128xf32>, vector<8x128xf32> -> vector<8x128xf32>
    %70 = vector.broadcast %12 : vector<1x128xf32> to vector<8x128xf32>
    %71 = arith.addf %69, %70 : vector<8x128xf32>
    %cst_24 = arith.constant 0.000000e+00 : f32
    %72 = vector.broadcast %cst_24 : f32 to vector<8x128xf32>
    %73 = arith.maximumf %71, %72 : vector<8x128xf32>
    %cst_25 = arith.constant dense<0.000000e+00> : vector<1x128xf32>
    %74 = tpu.matmul %16, %73, %cst_25 {dimension_numbers = #tpu.dot_dimension_numbers<[1], [0], [0], [1], [0, 0, 1, 1], [], []>} : vector<1x8xf32>, vector<8x128xf32>, vector<1x128xf32> -> vector<1x128xf32>
    %cst_26 = arith.constant 1.250000e-01 : f32
    %75 = vector.broadcast %cst_26 : f32 to vector<1x128xf32>
    %76 = arith.mulf %74, %75 : vector<1x128xf32>
    %77 = arith.mulf %73, %73 : vector<8x128xf32>
    %cst_27 = arith.constant dense<0.000000e+00> : vector<1x128xf32>
    %78 = tpu.matmul %16, %77, %cst_27 {dimension_numbers = #tpu.dot_dimension_numbers<[1], [0], [0], [1], [0, 0, 1, 1], [], []>} : vector<1x8xf32>, vector<8x128xf32>, vector<1x128xf32> -> vector<1x128xf32>
    %cst_28 = arith.constant 1.250000e-01 : f32
    %79 = vector.broadcast %cst_28 : f32 to vector<1x128xf32>
    %80 = arith.mulf %78, %79 : vector<1x128xf32>
    %81 = arith.mulf %76, %76 : vector<1x128xf32>
    %82 = arith.subf %80, %81 : vector<1x128xf32>
    %cst_29 = arith.constant 0.000000e+00 : f32
    %83 = vector.broadcast %cst_29 : f32 to vector<1x128xf32>
    %84 = arith.maximumf %82, %83 : vector<1x128xf32>
    %cst_30 = arith.constant 9.99999974E-6 : f32
    %85 = vector.broadcast %cst_30 : f32 to vector<1x128xf32>
    %86 = arith.addf %84, %85 : vector<1x128xf32>
    %87 = math.rsqrt %86 : vector<1x128xf32>
    %88 = arith.mulf %13, %87 : vector<1x128xf32>
    %89 = vector.broadcast %76 : vector<1x128xf32> to vector<8x128xf32>
    %90 = arith.subf %73, %89 : vector<8x128xf32>
    %91 = vector.broadcast %88 : vector<1x128xf32> to vector<8x128xf32>
    %92 = arith.mulf %90, %91 : vector<8x128xf32>
    %93 = vector.broadcast %14 : vector<1x128xf32> to vector<8x128xf32>
    %94 = arith.addf %92, %93 : vector<8x128xf32>
    %cst_31 = arith.constant dense<0.000000e+00> : vector<8x128xf32>
    %95 = tpu.matmul %94, %4, %cst_31 {dimension_numbers = #tpu.dot_dimension_numbers<[1], [0], [0], [1], [0, 0, 1, 1], [], []>} : vector<8x128xf32>, vector<128x128xf32>, vector<8x128xf32> -> vector<8x128xf32>
    %96 = vector.broadcast %15 : vector<1x128xf32> to vector<8x128xf32>
    %97 = arith.addf %95, %96 : vector<8x128xf32>
    %c0_32 = arith.constant 0 : index
    %c0_33 = arith.constant 0 : index
    %98 = vector.load %arg2[%c0_32, %c0_33] : memref<8x128xf32, #tpu.memory_space<vmem>>, vector<8x128xf32>
    tpu.vector_store %arg2[%c0_32, %c0_33], %97 {strides = array<i32>} : memref<8x128xf32, #tpu.memory_space<vmem>>, vector<8x128xf32>,
    return
  }
}

</mosaic_0001>

<bundles_post_ra>
// kernel: tpu_custom_call.1
= control target key start
LH: loop header
LB: loop body
LE: loop exit
PB: predicated region body
PF: predicated region fallthrough
CT: control target
= control target key end

     0   :  { %7 = vsyncpa [#allocation3], 0  ;;  %s1427_s0 = inlined_call_operand.hbm [shape: f32[8,256], index: 0, kind: input, shape index: {}]   ;;  %s1428_s1 = inlined_call_operand.hbm [shape: f32[656,128], index: 1, kind: input, shape index: {}]   ;;  %s1429_s2 = inlined_call_operand.hbm [shape: f32[8,128], index: 2, kind: output, shape index: {}]  }
   0x1   :  { %8 = vsyncpa [#allocation6], 0 }
   0x2   :  { %9 = vsyncpa [#allocation4], 0  ;;  %s1262_s9 = smov [#allocation2]   ;;  %s1263_s11 = smov [#allocation5]  }
   0x3   :  { %s16_s10 = sshll.u32 %s1262_s9, 4  ;;  %s25_s12 = sshll.u32 %s1263_s11, 4  ;;  %s17_s10 = int_to_ptr.vmem [resolvable:$true] %s16_s10  ;;  %s26_s12 = int_to_ptr.vmem [resolvable:$true] %s25_s12 }
   0x4   :  { %s1204_s13 = scalar_lea.vmem %s17_s10, 256  ;;  %p1209_p1 = scmp.lt.s32.totalorder %s17_s10, %s17_s10 }
   0x5   :  { %p1205_p0 = scmp.ne.s32.totalorder %s17_s10, %s1204_s13  ;;  %p1210_p2 = scmp.lt.s32.totalorder %s1204_s13, %s1204_s13 }
   0x7   :  { %p1211_p3 = por %p1210_p2, %p1209_p1 }
   0x9   :  { %p1212_p4 = pnand %p1211_p3, %p1205_p0 }
   0xb   :  { %1215 = shalt.err (!%p1212_p4)
}
   0xc   :  { %19 = dma.hbm_to_vmem [thread:$0]  %s1427_s0, 256, %s17_s10, [#allocation3]  }
   0xd   :  { %s1224_s16 = scalar_lea.vmem %s26_s12, 10496  ;;  %p1229_p6 = scmp.lt.s32.totalorder %s26_s12, %s26_s12 }
   0xe   :  { %p1225_p5 = scmp.ne.s32.totalorder %s26_s12, %s1224_s16  ;;  %p1230_p7 = scmp.lt.s32.totalorder %s1224_s16, %s1224_s16 }
  0x10   :  { %p1231_p8 = por %p1230_p7, %p1229_p6 }
  0x12   :  { %p1232_p9 = pnand %p1231_p8, %p1225_p5 }
  0x14   :  { %1235 = shalt.err (!%p1232_p9)
}
  0x15   :  { %s1264_s17 = smov 128   ;;  %s1265_s18 = smov 8  }
  0x16   :  { %31 = dma.hbm_to_vmem [thread:$0]  %s1428_s1, 10496, %s26_s12, [#allocation6], %s1264_s17, %s1264_s17, %s1265_s18  }
  0x17   :  { %1256 = dma.done.wait [#allocation3], 256  }
  0x18   :  { %1257 = vsyncadd [#allocation3], 4294967040 }
  0x19   :  { %1258 = dma.done.wait [#allocation6], 10496  }
  0x1a   :  { %1259 = vsyncadd [#allocation6], 4294956800  ;;  %v71_v0 = vld [vmem:[#allocation5 + $0xf8] sm:$0xff]  ;;  %v70_v2 = vld [vmem:[#allocation5 + $0xf0] sm:$0xff]  ;;  %v1266_v34 = vmov 0.0   ;;  %vm1267_vm0 = vmmov 0   ;;  %v122_v35 = vlaneseq }
  0x1b   :  { %v55_v1 = vld [vmem:[#allocation5 + $0x78] sm:$0xff]  ;;  %949 = vmatprep.subr.mxu0 %v71_v0  ;;  %v54_v3 = vld [vmem:[#allocation5 + $0x70] sm:$0xff]  ;;  %v69_v4 = vld [vmem:[#allocation5 + $0xe8] sm:$0xff]  ;;  %1047 = vmatprep.subr.mxu1 %v1266_v34  ;;  %vm197_vm1 = vcmask 64512   ;;  %v1268_v46 = vmov 1.0   ;;  %s1269_s0 = smov [#allocation7]  }
  0x1c   :  { %950 = vmatpush3.msra.mxu0 %v55_v1  ;;  %v53_v5 = vld [vmem:[#allocation5 + $0x68] sm:$0xff]  ;;  %v68_v6 = vld [vmem:[#allocation5 + $0xe0] sm:$0xff]  ;;  %v67_v8 = vld [vmem:[#allocation5 + $0xd8] sm:$0xff]  ;;  %1049 = vmatprep.mubr.msk.f32.mxu1 %vm1267_vm0, %v1266_v34  ;;  %v1297_v36 = vshrl.u32 %v122_v35, 7  ;;  %s933_s1 = sshll.u32 %s1269_s0, 4  ;;  %s934_s1 = int_to_ptr.vmem [resolvable:$true] %s933_s1 }
  0x1d   :  { %951 = vmatprep.subr.mxu0 %v70_v2  ;;  %v52_v7 = vld [vmem:[#allocation5 + $0x60] sm:$0xff]  ;;  %v51_v9 = vld [vmem:[#allocation5 + $0x58] sm:$0xff]  ;;  %v66_v10 = vld [vmem:[#allocation5 + $0xd0] sm:$0xff]  ;;  %s1236_s21 = scalar_lea.vmem %s934_s1, 128  ;;  %p1241_p11 = scmp.lt.s32.totalorder %s934_s1, %s934_s1 }
  0x1e   :  { %952 = vmatpush3.msra.mxu0 %v54_v3  ;;  %v50_v11 = vld [vmem:[#allocation5 + $0x50] sm:$0xff]  ;;  %v65_v12 = vld [vmem:[#allocation5 + $0xc8] sm:$0xff]  ;;  %v39_v13 = vld [vmem:[#allocation2 + $0x8] sm:$0xff]  ;;  %v1300_v37 = vsub.s32 0, %v1297_v36  ;;  %p1237_p10 = scmp.ne.s32.totalorder %s934_s1, %s1236_s21  ;;  %p1242_p12 = scmp.lt.s32.totalorder %s1236_s21, %s1236_s21 }
  0x1f   :  { %953 = vmatprep.subr.mxu0 %v69_v4  ;;  %v49_v14 = vld [vmem:[#allocation5 + $0x48] sm:$0xff]  ;;  %190 = vmatprep.mubr.f32.mxu0 %v39_v13  ;;  %v64_v15 = vld [vmem:[#allocation5 + $0xc0] sm:$0xff]  ;;  %v63_v17 = vld [vmem:[#allocation5 + $0xb8] sm:$0xff]  ;;  %v365_v13 = vsub.s32 2, %v1297_v36 }
  0x20   :  { %954 = vmatpush3.msra.mxu0 %v53_v5  ;;  %v48_v16 = vld [vmem:[#allocation5 + $0x40] sm:$0xff]  ;;  %v47_v18 = vld [vmem:[#allocation5 + $0x38] sm:$0xff]  ;;  %v62_v19 = vld [vmem:[#allocation5 + $0xb0] sm:$0xff]  ;;  %p1243_p13 = por %p1242_p12, %p1241_p11 }
  0x21   :  { %955 = vmatprep.subr.mxu0 %v68_v6  ;;  %v46_v20 = vld [vmem:[#allocation5 + $0x30] sm:$0xff]  ;;  %v61_v21 = vld [vmem:[#allocation5 + $0xa8] sm:$0xff]  ;;  %v60_v23 = vld [vmem:[#allocation5 + $0xa0] sm:$0xff] }
  0x22   :  { %956 = vmatpush3.msra.mxu0 %v52_v7  ;;  %v45_v22 = vld [vmem:[#allocation5 + $0x28] sm:$0xff]  ;;  %v44_v24 = vld [vmem:[#allocation5 + $0x20] sm:$0xff]  ;;  %v59_v25 = vld [vmem:[#allocation5 + $0x98] sm:$0xff]  ;;  %p1244_p0 = pnand %p1243_p13, %p1237_p10 }
  0x23   :  { %957 = vmatprep.subr.mxu0 %v67_v8  ;;  %v43_v26 = vld [vmem:[#allocation5 + $0x18] sm:$0xff]  ;;  %v58_v27 = vld [vmem:[#allocation5 + $0x90] sm:$0xff]  ;;  %v57_v29 = vld [vmem:[#allocation5 + $0x88] sm:$0xff] }
  0x24   :  { %958 = vmatpush3.msra.mxu0 %v51_v9  ;;  %v42_v28 = vld [vmem:[#allocation5 + $0x10] sm:$0xff]  ;;  %v41_v30 = vld [vmem:[#allocation5 + $0x8] sm:$0xff]  ;;  %v56_v31 = vld [vmem:[#allocation5 + $0x80] sm:$0xff] }
  0x25   :  { %959 = vmatprep.subr.mxu0 %v66_v10  ;;  %v40_v32 = vld [vmem:[#allocation5] sm:$0xff]  ;;  %v38_v33 = vld [vmem:[#allocation2] sm:$0xff]  ;;  %v87_v47 = vld [vmem:[#allocation5 + $0x178] sm:$0xff] }
  0x26   :  { %960 = vmatpush3.msra.mxu0 %v50_v11  ;;  %v1302_v38 = vld [vmem:[#allocation5 + $0x280] sm:$0xff]  ;;  %v86_v48 = vld [vmem:[#allocation5 + $0x170] sm:$0xff]  ;;  %v85_v49 = vld [vmem:[#allocation5 + $0x168] sm:$0xff] }
  0x27   :  { %961 = vmatprep.subr.mxu0 %v65_v12  ;;  %v125_v40 = vrot.slane %v1302_v38, %v1300_v37  ;;  %v84_v50 = vld [vmem:[#allocation5 + $0x160] sm:$0xff]  ;;  %v83_v51 = vld [vmem:[#allocation5 + $0x158] sm:$0xff]  ;;  %v82_v52 = vld [vmem:[#allocation5 + $0x150] sm:$0xff]  ;;  %v360_v12 = vsub.s32 1, %v1297_v36 }
  0x28   :  { %962 = vmatpush3.msra.mxu0 %v49_v14  ;;  %v81_v53 = vld [vmem:[#allocation5 + $0x148] sm:$0xff]  ;;  %v80_v54 = vld [vmem:[#allocation5 + $0x140] sm:$0xff]  ;;  %v79_v55 = vld [vmem:[#allocation5 + $0x138] sm:$0xff] }
  0x29   :  { %963 = vmatprep.subr.mxu0 %v64_v15  ;;  %v78_v56 = vld [vmem:[#allocation5 + $0x130] sm:$0xff]  ;;  %v77_v57 = vld [vmem:[#allocation5 + $0x128] sm:$0xff]  ;;  %v76_v58 = vld [vmem:[#allocation5 + $0x120] sm:$0xff] }
  0x2a   :  { %964 = vmatpush3.msra.mxu0 %v48_v16  ;;  %v75_v59 = vld [vmem:[#allocation5 + $0x118] sm:$0xff]  ;;  %v74_v60 = vld [vmem:[#allocation5 + $0x110] sm:$0xff]  ;;  %v73_v61 = vld [vmem:[#allocation5 + $0x108] sm:$0xff] }
  0x2b   :  { %965 = vmatprep.subr.mxu0 %v63_v17  ;;  %v72_v62 = vld [vmem:[#allocation5 + $0x100] sm:$0xff]  ;;  %v366_v17 = vrot.slane %v1302_v38, %v365_v13  ;;  %v119_v13 = vld [vmem:[#allocation5 + $0x278] sm:$0xff] }
  0x2c   :  { %966 = vmatpush3.msra.mxu0 %v47_v18  ;;  %v96_v35 = vld [vmem:[#allocation5 + $0x1c0] sm:$0xff] }
  0x2d   :  { %967 = vmatprep.subr.mxu0 %v62_v19 }
  0x2e   :  { %968 = vmatpush3.msra.mxu0 %v46_v20  ;;  %v370_v20 = vsub.s32 3, %v1297_v36 }
  0x2f   :  { %969 = vmatprep.subr.mxu0 %v61_v21 }
  0x30   :  { %970 = vmatpush3.msra.mxu0 %v45_v22  ;;  %v371_v21 = vrot.slane %v1302_v38, %v370_v20  ;;  %v111_v20 = vld [vmem:[#allocation5 + $0x238] sm:$0xff] }
  0x31   :  { %971 = vmatprep.subr.mxu0 %v60_v23 }
  0x32   :  { %972 = vmatpush3.msra.mxu0 %v44_v24 }
  0x33   :  { %973 = vmatprep.subr.mxu0 %v59_v25 }
  0x34   :  { %974 = vmatpush3.msra.mxu0 %v43_v26 }
  0x35   :  { %975 = vmatprep.subr.mxu0 %v58_v27  ;;  %v103_v27 = vld [vmem:[#allocation5 + $0x1f8] sm:$0xff] }
  0x36   :  { %976 = vmatpush3.msra.mxu0 %v42_v28  ;;  %v102_v28 = vld [vmem:[#allocation5 + $0x1f0] sm:$0xff] }
  0x37   :  { %977 = vmatprep.subr.mxu0 %v57_v29  ;;  %v101_v29 = vld [vmem:[#allocation5 + $0x1e8] sm:$0xff] }
  0x38   :  { %978 = vmatpush3.msra.mxu0 %v41_v30  ;;  %v100_v30 = vld [vmem:[#allocation5 + $0x1e0] sm:$0xff] }
  0x39   :  { %979 = vmatprep.subr.mxu0 %v56_v31  ;;  %v99_v31 = vld [vmem:[#allocation5 + $0x1d8] sm:$0xff] }
  0x3a   :  { %980 = vmatpush3.msra.mxu0 %v40_v32  ;;  %v98_v32 = vld [vmem:[#allocation5 + $0x1d0] sm:$0xff] }
  0x3b   :  { %191 = vmatmul.mubr.f32.vlgmr.msra.gmra.mxu0 %v38_v33  ;;  %1097 = vmatprep.subr.mxu0 %v1266_v34  ;;  %v97_v33 = vld [vmem:[#allocation5 + $0x1c8] sm:$0xff] }
  0x3c   :  { %1099 = vmatprep.mubr.msk.f32.mxu0 %vm1267_vm0, %v1266_v34 }
  0xfb   :  { %v981_v39 = vpop.f32.mrf.mxu0 }
  0xfd   :  { %v982_v41 = vpop.f32.mrf.mxu0 }
  0xfe   :  { %v983_v42 = vadd.f32 %v982_v41, %v981_v39  ;;  %v95_v39 = vld [vmem:[#allocation5 + $0x1b8] sm:$0xff]  ;;  %v93_v41 = vld [vmem:[#allocation5 + $0x1a8] sm:$0xff] }
 0x100   :  { %v193_v43 = vadd.f32 %v983_v42, %v125_v40  ;;  %v94_v40 = vld [vmem:[#allocation5 + $0x1b0] sm:$0xff]  ;;  %v92_v42 = vld [vmem:[#allocation5 + $0x1a0] sm:$0xff] }
 0x102   :  { %v1306_v44 = vmax.f32 %v193_v43, 0.0  ;;  %v91_v43 = vld [vmem:[#allocation5 + $0x198] sm:$0xff] }
 0x104   :  { %1048 = vmatpush3.msra.mxu1 %v1306_v44  ;;  %v272_v45 = vmul.f32 %v1306_v44, %v1306_v44 }
 0x105   :  { %1050 = vmatmul.mubr.msk.f32.vlgmr.msra.gmra.mxu1 %vm197_vm1, %v1268_v46  ;;  %1052 = vmatprep.subr.mxu1 %v1266_v34 }
 0x106   :  { %1053 = vmatpush3.msra.mxu1 %v272_v45  ;;  %1054 = vmatprep.mubr.msk.f32.mxu1 %vm1267_vm0, %v1266_v34  ;;  %v89_v45 = vld [vmem:[#allocation5 + $0x188] sm:$0xff] }
 0x107   :  { %1057 = vmatprep.subr.mxu1 %v1266_v34 }
 0x109   :  { %1055 = vmatmul.mubr.msk.f32.vlgmr.msra.gmra.mxu1 %vm197_vm1, %v1268_v46 }
 0x10a   :  { %1089 = vmatprep.mubr.msk.f32.mxu1 %vm1267_vm0, %v1266_v34  ;;  %1058 = vmatpush3.msra.mxu1 %v87_v47  ;;  %v88_v47 = vld [vmem:[#allocation5 + $0x180] sm:$0xff] }
 0x10b   :  { %1059 = vmatprep.subr.mxu1 %v1266_v34 }
 0x10c   :  { %1060 = vmatpush3.msra.mxu1 %v86_v48 }
 0x10d   :  { %1061 = vmatprep.subr.mxu1 %v1266_v34 }
 0x10e   :  { %1062 = vmatpush3.msra.mxu1 %v85_v49 }
 0x10f   :  { %1063 = vmatprep.subr.mxu1 %v1266_v34 }
 0x110   :  { %1064 = vmatpush3.msra.mxu1 %v84_v50 }
 0x111   :  { %1065 = vmatprep.subr.mxu1 %v1266_v34 }
 0x112   :  { %1066 = vmatpush3.msra.mxu1 %v83_v51 }
 0x113   :  { %1067 = vmatprep.subr.mxu1 %v1266_v34 }
 0x114   :  { %1068 = vmatpush3.msra.mxu1 %v82_v52 }
 0x115   :  { %1069 = vmatprep.subr.mxu1 %v1266_v34 }
 0x116   :  { %1070 = vmatpush3.msra.mxu1 %v81_v53 }
 0x117   :  { %1071 = vmatprep.subr.mxu1 %v1266_v34 }
 0x118   :  { %1072 = vmatpush3.msra.mxu1 %v80_v54 }
 0x119   :  { %1073 = vmatprep.subr.mxu1 %v1266_v34 }
 0x11a   :  { %1074 = vmatpush3.msra.mxu1 %v79_v55 }
 0x11b   :  { %1075 = vmatprep.subr.mxu1 %v1266_v34 }
 0x11c   :  { %1076 = vmatpush3.msra.mxu1 %v78_v56 }
 0x11d   :  { %1077 = vmatprep.subr.mxu1 %v1266_v34 }
 0x11e   :  { %1078 = vmatpush3.msra.mxu1 %v77_v57 }
 0x11f   :  { %1079 = vmatprep.subr.mxu1 %v1266_v34 }
 0x120   :  { %1080 = vmatpush3.msra.mxu1 %v76_v58 }
 0x121   :  { %1081 = vmatprep.subr.mxu1 %v1266_v34 }
 0x122   :  { %1082 = vmatpush3.msra.mxu1 %v75_v59 }
 0x123   :  { %1083 = vmatprep.subr.mxu1 %v1266_v34 }
 0x124   :  { %1084 = vmatpush3.msra.mxu1 %v74_v60 }
 0x125   :  { %1085 = vmatprep.subr.mxu1 %v1266_v34 }
 0x126   :  { %1086 = vmatpush3.msra.mxu1 %v73_v61  ;;  %v602_v61 = vsub.s32 4, %v1297_v36 }
 0x127   :  { %1087 = vmatprep.subr.mxu1 %v1266_v34 }
 0x128   :  { %1088 = vmatpush3.msra.mxu1 %v72_v62  ;;  %v607_v62 = vsub.s32 5, %v1297_v36 }
 0x129   :  { %1092 = vmatprep.subr.mxu1 %v1266_v34 }
 0x1c5   :  { %v267_v63 = vpop.f32.mrf.mxu1 }
 0x1c6   :  { %v271_v0 = vmul.f32 0.125, %v267_v63 }
 0x1c7   :  { %v1051_v1 = vpop.f32.mrf.mxu1 }
 0x1c8   :  { %v344_v3 = vmul.f32 %v271_v0, %v271_v0  ;;  %v356_v10 = vrot.slane %v271_v0, %v1300_v37 }
 0x1c9   :  { %v339_v2 = vpop.f32.mrf.mxu1 }
 0x1ca   :  { %v343_v4 = vmul.f32 0.125, %v339_v2  ;;  %v357_v15 = vsub.f32 %v1306_v44, %v356_v10  ;;  %v90_v44 = vld [vmem:[#allocation5 + $0x190] sm:$0xff]  ;;  %v608_v2 = vrot.slane %v1302_v38, %v607_v62 }
 0x1cb   :  { %v1056_v5 = vpop.f32.mrf.mxu1 }
 0x1cc   :  { %v345_v6 = vsub.f32 %v343_v4, %v344_v3  ;;  %v612_v5 = vsub.s32 6, %v1297_v36 }
 0x1ce   :  { %v346_v7 = vmax.f32 %v345_v6, 0.0  ;;  %v613_v6 = vrot.slane %v1302_v38, %v612_v5 }
 0x1d0   :  { %v347_v8 = vadd.f32 1e-05, %v346_v7 }
 0x1d2   :  { %1190 = vrsqrt.f32 %v347_v8 }
 0x1df   :  { %v1191_v9 = vpop.eup %1190 }
 0x1e0   :  { %v350_v11 = vrot.slane %v1191_v9, 7 }
 0x1e2   :  { %v352_v14 = vmul.f32 %v350_v11, %v1302_v38 }
 0x1e4   :  { %v361_v16 = vrot.slane %v352_v14, %v360_v12  ;;  %v118_v14 = vld [vmem:[#allocation5 + $0x270] sm:$0xff] }
 0x1e6   :  { %v362_v18 = vmul.f32 %v361_v16, %v357_v15  ;;  %v117_v15 = vld [vmem:[#allocation5 + $0x268] sm:$0xff]  ;;  %v116_v16 = vld [vmem:[#allocation5 + $0x260] sm:$0xff] }
 0x1e8   :  { %v367_v19 = vadd.f32 %v366_v17, %v362_v18  ;;  %v114_v17 = vld [vmem:[#allocation5 + $0x250] sm:$0xff]  ;;  %v113_v18 = vld [vmem:[#allocation5 + $0x248] sm:$0xff] }
 0x1ea   :  { %1090 = vmatmul.mubr.f32.vlgmr.msra.gmra.mxu1 %v367_v19  ;;  %v112_v19 = vld [vmem:[#allocation5 + $0x240] sm:$0xff] }
 0x1eb   :  { %1094 = vmatprep.mubr.msk.f32.mxu1 %vm1267_vm0, %v1266_v34 }
 0x2aa   :  { %v438_v22 = vpop.f32.mrf.mxu1 }
 0x2ab   :  { %v439_v23 = vadd.f32 %v438_v22, %v371_v21  ;;  %v110_v21 = vld [vmem:[#allocation5 + $0x230] sm:$0xff]  ;;  %v109_v22 = vld [vmem:[#allocation5 + $0x228] sm:$0xff] }
 0x2ac   :  { %v1091_v24 = vpop.f32.mrf.mxu1 }
 0x2ad   :  { %v1349_v25 = vmax.f32 %v439_v23, 0.0  ;;  %v108_v23 = vld [vmem:[#allocation5 + $0x220] sm:$0xff]  ;;  %v107_v24 = vld [vmem:[#allocation5 + $0x218] sm:$0xff] }
 0x2af   :  { %v514_v26 = vmul.f32 %v1349_v25, %v1349_v25  ;;  %1093 = vmatpush3.msra.mxu1 %v1349_v25 }
 0x2b0   :  { %1095 = vmatmul.mubr.msk.f32.vlgmr.msra.gmra.mxu1 %vm197_vm1, %v1268_v46  ;;  %1102 = vmatprep.subr.mxu1 %v1266_v34 }
 0x2b1   :  { %1098 = vmatpush3.msra.mxu0 %v514_v26  ;;  %1134 = vmatprep.mubr.msk.f32.mxu1 %vm1267_vm0, %v1266_v34  ;;  %v105_v26 = vld [vmem:[#allocation5 + $0x208] sm:$0xff] }
 0x2b2   :  { %1100 = vmatmul.mubr.msk.f32.vlgmr.msra.gmra.mxu0 %vm197_vm1, %v1268_v46  ;;  %1137 = vmatprep.subr.mxu0 %v1266_v34 }
 0x2b3   :  { %1139 = vmatprep.mubr.msk.f32.mxu0 %vm1267_vm0, %v1266_v34  ;;  %1103 = vmatpush3.msra.mxu1 %v103_v27  ;;  %v104_v27 = vld [vmem:[#allocation5 + $0x200] sm:$0xff] }
 0x2b4   :  { %1104 = vmatprep.subr.mxu1 %v1266_v34 }
 0x2b5   :  { %1105 = vmatpush3.msra.mxu1 %v102_v28 }
 0x2b6   :  { %1106 = vmatprep.subr.mxu1 %v1266_v34 }
 0x2b7   :  { %1107 = vmatpush3.msra.mxu1 %v101_v29 }
 0x2b8   :  { %1108 = vmatprep.subr.mxu1 %v1266_v34 }
 0x2b9   :  { %1109 = vmatpush3.msra.mxu1 %v100_v30 }
 0x2ba   :  { %1110 = vmatprep.subr.mxu1 %v1266_v34 }
 0x2bb   :  { %1111 = vmatpush3.msra.mxu1 %v99_v31 }
 0x2bc   :  { %1112 = vmatprep.subr.mxu1 %v1266_v34 }
 0x2bd   :  { %1113 = vmatpush3.msra.mxu1 %v98_v32 }
 0x2be   :  { %1114 = vmatprep.subr.mxu1 %v1266_v34 }
 0x2bf   :  { %1115 = vmatpush3.msra.mxu1 %v97_v33 }
 0x2c0   :  { %1116 = vmatprep.subr.mxu1 %v1266_v34 }
 0x2c1   :  { %1117 = vmatpush3.msra.mxu1 %v96_v35 }
 0x2c2   :  { %1118 = vmatprep.subr.mxu1 %v1266_v34 }
 0x2c3   :  { %1119 = vmatpush3.msra.mxu1 %v95_v39 }
 0x2c4   :  { %1120 = vmatprep.subr.mxu1 %v1266_v34 }
 0x2c5   :  { %1121 = vmatpush3.msra.mxu1 %v94_v40 }
 0x2c6   :  { %1122 = vmatprep.subr.mxu1 %v1266_v34 }
 0x2c7   :  { %1123 = vmatpush3.msra.mxu1 %v93_v41 }
 0x2c8   :  { %1124 = vmatprep.subr.mxu1 %v1266_v34 }
 0x2c9   :  { %1125 = vmatpush3.msra.mxu1 %v92_v42 }
 0x2ca   :  { %1126 = vmatprep.subr.mxu1 %v1266_v34 }
 0x2cb   :  { %1127 = vmatpush3.msra.mxu1 %v91_v43 }
 0x2cc   :  { %1128 = vmatprep.subr.mxu1 %v1266_v34 }
 0x2cd   :  { %1129 = vmatpush3.msra.mxu1 %v90_v44 }
 0x2ce   :  { %1130 = vmatprep.subr.mxu1 %v1266_v34 }
 0x2cf   :  { %1131 = vmatpush3.msra.mxu1 %v89_v45  ;;  %v844_v45 = vsub.s32 7, %v1297_v36 }
 0x2d0   :  { %1132 = vmatprep.subr.mxu1 %v1266_v34 }
 0x2d1   :  { %1133 = vmatpush3.msra.mxu1 %v88_v47  ;;  %v121_v47 = vld [vmem:[#allocation5 + $0x288] sm:$0xff] }
 0x370   :  { %v509_v48 = vpop.f32.mrf.mxu1 }
 0x371   :  { %v513_v49 = vmul.f32 0.125, %v509_v48 }
 0x372   :  { %v1096_v50 = vpop.f32.mrf.mxu1  ;;  %v581_v51 = vpop.f32.mrf.mxu0 }
 0x373   :  { %v586_v52 = vmul.f32 %v513_v49, %v513_v49  ;;  %v585_v53 = vmul.f32 0.125, %v581_v51  ;;  %v598_v59 = vrot.slane %v513_v49, %v1300_v37  ;;  %v850_v50 = vrot.slane %v121_v47, %v1300_v37 }
 0x374   :  { %v1101_v54 = vpop.f32.mrf.mxu0 }
 0x375   :  { %v587_v55 = vsub.f32 %v585_v53, %v586_v52  ;;  %v599_v0 = vsub.f32 %v1349_v25, %v598_v59  ;;  %v106_v25 = vld [vmem:[#allocation5 + $0x210] sm:$0xff]  ;;  %v855_v53 = vrot.slane %v121_v47, %v360_v12 }
 0x377   :  { %v588_v56 = vmax.f32 %v587_v55, 0.0 }
 0x379   :  { %v589_v57 = vadd.f32 1e-05, %v588_v56 }
 0x37b   :  { %1192 = vrsqrt.f32 %v589_v57 }
 0x388   :  { %v1193_v58 = vpop.eup %1192 }
 0x389   :  { %v592_v60 = vrot.slane %v1193_v58, 4 }
 0x38b   :  { %v594_v63 = vmul.f32 %v592_v60, %v1302_v38 }
 0x38d   :  { %v603_v1 = vrot.slane %v594_v63, %v602_v61 }
 0x38f   :  { %v604_v3 = vmul.f32 %v603_v1, %v599_v0 }
 0x391   :  { %v609_v4 = vadd.f32 %v608_v2, %v604_v3 }
 0x393   :  { %1135 = vmatmul.mubr.f32.vlgmr.msra.gmra.mxu1 %v609_v4 }
 0x453   :  { %v680_v7 = vpop.f32.mrf.mxu1 }
 0x454   :  { %v681_v8 = vadd.f32 %v680_v7, %v613_v6 }
 0x455   :  { %v1136_v9 = vpop.f32.mrf.mxu1 }
 0x456   :  { %v1387_v10 = vmax.f32 %v681_v8, 0.0 }
 0x458   :  { %v756_v11 = vmul.f32 %v1387_v10, %v1387_v10  ;;  %1138 = vmatpush3.msra.mxu0 %v1387_v10 }
 0x459   :  { %1140 = vmatmul.mubr.msk.f32.vlgmr.msra.gmra.mxu0 %vm197_vm1, %v1268_v46  ;;  %1142 = vmatprep.subr.mxu0 %v1266_v34 }
 0x45a   :  { %1143 = vmatpush3.msra.mxu0 %v756_v11  ;;  %1144 = vmatprep.mubr.msk.f32.mxu0 %vm1267_vm0, %v1266_v34 }
 0x45b   :  { %1147 = vmatprep.subr.mxu0 %v1266_v34 }
 0x45d   :  { %1145 = vmatmul.mubr.msk.f32.vlgmr.msra.gmra.mxu0 %vm197_vm1, %v1268_v46  ;;  %v115_v46 = vld [vmem:[#allocation5 + $0x258] sm:$0xff] }
 0x45e   :  { %1179 = vmatprep.mubr.msk.f32.mxu0 %vm1267_vm0, %v1266_v34  ;;  %1148 = vmatpush3.msra.mxu0 %v119_v13 }
 0x45f   :  { %1149 = vmatprep.subr.mxu0 %v1266_v34 }
 0x460   :  { %1150 = vmatpush3.msra.mxu0 %v118_v14 }
 0x461   :  { %1151 = vmatprep.subr.mxu0 %v1266_v34 }
 0x462   :  { %1152 = vmatpush3.msra.mxu0 %v117_v15 }
 0x463   :  { %1153 = vmatprep.subr.mxu0 %v1266_v34 }
 0x464   :  { %1154 = vmatpush3.msra.mxu0 %v116_v16 }
 0x465   :  { %1155 = vmatprep.subr.mxu0 %v1266_v34 }
 0x466   :  { %1156 = vmatpush3.msra.mxu0 %v115_v46 }
 0x467   :  { %1157 = vmatprep.subr.mxu0 %v1266_v34 }
 0x468   :  { %1158 = vmatpush3.msra.mxu0 %v114_v17 }
 0x469   :  { %1159 = vmatprep.subr.mxu0 %v1266_v34 }
 0x46a   :  { %1160 = vmatpush3.msra.mxu0 %v113_v18 }
 0x46b   :  { %1161 = vmatprep.subr.mxu0 %v1266_v34 }
 0x46c   :  { %1162 = vmatpush3.msra.mxu0 %v112_v19 }
 0x46d   :  { %1163 = vmatprep.subr.mxu0 %v1266_v34 }
 0x46e   :  { %1164 = vmatpush3.msra.mxu0 %v111_v20 }
 0x46f   :  { %1165 = vmatprep.subr.mxu0 %v1266_v34 }
 0x470   :  { %1166 = vmatpush3.msra.mxu0 %v110_v21 }
 0x471   :  { %1167 = vmatprep.subr.mxu0 %v1266_v34 }
 0x472   :  { %1168 = vmatpush3.msra.mxu0 %v109_v22 }
 0x473   :  { %1169 = vmatprep.subr.mxu0 %v1266_v34 }
 0x474   :  { %1170 = vmatpush3.msra.mxu0 %v108_v23 }
 0x475   :  { %1171 = vmatprep.subr.mxu0 %v1266_v34 }
 0x476   :  { %1172 = vmatpush3.msra.mxu0 %v107_v24 }
 0x477   :  { %1173 = vmatprep.subr.mxu0 %v1266_v34 }
 0x478   :  { %1174 = vmatpush3.msra.mxu0 %v106_v25 }
 0x479   :  { %1175 = vmatprep.subr.mxu0 %v1266_v34 }
 0x47a   :  { %1176 = vmatpush3.msra.mxu0 %v105_v26 }
 0x47b   :  { %1177 = vmatprep.subr.mxu0 %v1266_v34 }
 0x47c   :  { %1178 = vmatpush3.msra.mxu0 %v104_v27 }
 0x519   :  { %v751_v28 = vpop.f32.mrf.mxu0 }
 0x51a   :  { %v755_v29 = vmul.f32 0.125, %v751_v28 }
 0x51b   :  { %v1141_v30 = vpop.f32.mrf.mxu0 }
 0x51c   :  { %v828_v32 = vmul.f32 %v755_v29, %v755_v29  ;;  %v840_v43 = vrot.slane %v755_v29, %v1300_v37 }
 0x51d   :  { %v823_v31 = vpop.f32.mrf.mxu0 }
 0x51e   :  { %v827_v33 = vmul.f32 0.125, %v823_v31  ;;  %v841_v48 = vsub.f32 %v1387_v10, %v840_v43 }
 0x51f   :  { %v1146_v35 = vpop.f32.mrf.mxu0 }
 0x520   :  { %v829_v39 = vsub.f32 %v827_v33, %v828_v32 }
 0x522   :  { %v830_v40 = vmax.f32 %v829_v39, 0.0 }
 0x524   :  { %v831_v41 = vadd.f32 1e-05, %v830_v40 }
 0x526   :  { %1194 = vrsqrt.f32 %v831_v41 }
 0x533   :  { %v1195_v42 = vpop.eup %1194 }
 0x534   :  { %v834_v44 = vrot.slane %v1195_v42, 1 }
 0x536   :  { %v836_v34 = vmul.f32 %v834_v44, %v1302_v38 }
 0x538   :  { %v845_v49 = vrot.slane %v836_v34, %v844_v45 }
 0x53a   :  { %v846_v51 = vmul.f32 %v845_v49, %v841_v48 }
 0x53c   :  { %v851_v52 = vadd.f32 %v850_v50, %v846_v51 }
 0x53e   :  { %1180 = vmatmul.mubr.f32.vlgmr.msra.gmra.mxu0 %v851_v52 }
 0x5fe   :  { %v922_v54 = vpop.f32.mrf.mxu0 }
 0x5ff   :  { %v923_v55 = vadd.f32 %v922_v54, %v855_v53 }
 0x600   :  { %v1181_v56 = vpop.f32.mrf.mxu0 }
 0x601   :  { %926 = vst [vmem:[#allocation7] sm:$0xff] %v923_v55 }
 0x602   :  { %1247 = shalt.err (!%p1244_p0)
}
 0x603   :  { %936 = dma.vmem_to_hbm [thread:$0]  %s934_s1, 128, %s1429_s2, [#allocation4]  }
 0x604   :  { %1260 = dma.done.wait [#allocation4], 128  }
 0x605   :  { %1261 = vsyncadd [#allocation4], 4294967168 }
 0x606   :  { %940 = vsyncpa [#allocation3], 1 }
 0x607   :  { %941 = vsyncpa [#allocation6], 1 }
 0x608   :  { %942 = vsyncpa [#allocation4], 1 }

</bundles_post_ra>
